<compile_context>
chip_gen: v7x
topology: tpu7x:2x2x1
jax: 0.10.0
libtpu: 0.0.40
codegen_flags: <defaults>
</compile_context>

<pallas_src>
import numpy as np
import jax
import jax.numpy as jnp
from jax.experimental import pallas as pl
from jax.experimental.pallas import tpu as pltpu

try:  # host-side Hungarian solver, exactly as the reference uses
    from scipy.optimize import linear_sum_assignment as _scipy_lsa
except ImportError:  # pragma: no cover
    _scipy_lsa = None

_LANES = 128
_D_PAD = 8            # D=3 zero-padded to one sublane quantum; MXU contraction K=8
_TARGET_STRIPS = 10   # even strip count -> 5/5 split across v7x's two TensorCores
_MAX_TM = 1024        # keeps the double-buffered output strip well inside VMEM


def _cdist_kernel(x_ref, yt_ref, d_ref):
    """One (tm, Np) strip of the pairwise Euclidean distance matrix.

    d[i, j] = sqrt(max(|x_i|^2 + |y_j|^2 - 2 <x_i, y_j>, 0))

    The strip is a single lane-dense output block (unmasked full-width stores);
    the kernel is HBM-write-bound, so the K=8 MXU matmul, the tiny norm
    reductions and the EUP sqrt all hide under the output DMA.
    """
    x = x_ref[...]                                               # (tm, Dp)
    yt = yt_ref[...]                                             # (Dp, Np) resident
    xy = jnp.dot(x, yt, preferred_element_type=jnp.float32)      # (tm, Np)  MXU
    xx = jnp.sum(x * x, axis=-1, keepdims=True)                  # (tm, 1)   VPU/XLU
    yy = jnp.sum(yt * yt, axis=0, keepdims=True)                 # (1, Np)   XLU
    d2 = jnp.maximum(xx + yy - 2.0 * xy, 0.0)                    # VPU
    d_ref[...] = jnp.sqrt(d2).astype(d_ref.dtype)                # EUP (free slot)


def _choose_tm(m, target_strips=_TARGET_STRIPS, max_tm=_MAX_TM):
    """Rows per output strip: multiple of 8, ~target_strips strips, minimal pad.

    For M=5000 this yields tm=504 -> 10 strips, only 40 padded rows (0.8%).
    """
    m8 = ((m + 7) // 8) * 8
    tm = ((m8 + target_strips * 8 - 1) // (target_strips * 8)) * 8
    return max(8, min(tm, max_tm, m8))


def pallas_cdist_padded(x, y, *, d_pad=_D_PAD):
    """Euclidean cdist via Pallas. x: (M, D), y: (N, D) -> PADDED (Mp, Np) f32.

    The padded rows/cols (distances to origin points) are intentionally NOT
    sliced off on device (that would be a second full HBM pass); the caller
    must slice `[:M, :N]` on the host before using the matrix.
    """
    x = jnp.asarray(x, jnp.float32)
    y = jnp.asarray(y, jnp.float32)
    M, D = x.shape
    N, D2 = y.shape
    assert D == D2 and D <= d_pad

    tm = _choose_tm(M)
    Mp = pl.cdiv(M, tm) * tm
    Np = pl.cdiv(N, _LANES) * _LANES      # full-width, lane-dense output strips
    Dp = d_pad

    # Zero-pad: padded points sit at the origin; padded rows/cols sliced on host.
    xp = jnp.zeros((Mp, Dp), jnp.float32).at[:M, :D].set(x)        # (Mp, Dp)
    ytp = jnp.zeros((Dp, Np), jnp.float32).at[:D, :N].set(y.T)     # (Dp, Np), resident

    # Double-buffered VMEM footprint (output strip dominates) + margin.
    vmem_bytes = 2 * 4 * (tm * Np + tm * Dp + Dp * Np)
    vmem_limit = int(min(max(vmem_bytes + vmem_bytes // 4 + (1 << 20),
                             32 * 1024 * 1024),
                         100 * 1024 * 1024))

    d = pl.pallas_call(
        _cdist_kernel,
        out_shape=jax.ShapeDtypeStruct((Mp, Np), jnp.float32),
        grid=(Mp // tm,),
        in_specs=[
            pl.BlockSpec((tm, Dp), lambda i: (i, 0)),   # x strip
            pl.BlockSpec((Dp, Np), lambda i: (0, 0)),   # y^T, fully VMEM-resident
        ],
        out_specs=pl.BlockSpec((tm, Np), lambda i: (i, 0)),
        compiler_params=pltpu.CompilerParams(
            # Single independent grid axis; "parallel" lets Mosaic shard the
            # even strip count 5/5 across both TensorCores on v7x.
            # TODO(synk): if an xprof trace on v7x shows a single active core,
            # switch to pltpu.CORE_PARALLEL / an explicit core axis.
            dimension_semantics=("parallel",),
            vmem_limit_bytes=vmem_limit,
        ),
        cost_estimate=pl.CostEstimate(
            flops=2 * Mp * Np * Dp,
            transcendentals=Mp * Np,
            bytes_accessed=4 * (Mp * Np + Mp * Dp + Dp * Np),
        ),
    )(xp, ytp)
    return d


def _hungarian_np(cost):
    """O(n^3) Hungarian algorithm on a square cost matrix (scipy-compatible)."""
    cost = np.asarray(cost, dtype=np.float64)
    n, m = cost.shape
    assert n == m, "numpy Hungarian fallback requires a square cost matrix"
    u = np.zeros(n + 1)
    v = np.zeros(n + 1)
    p = np.zeros(n + 1, dtype=np.int64)     # p[j]: row matched to column j (1-based)
    way = np.zeros(n + 1, dtype=np.int64)
    for i in range(1, n + 1):
        p[0] = i
        j0 = 0
        minv = np.full(n + 1, np.inf)
        used = np.zeros(n + 1, dtype=bool)
        while True:
            used[j0] = True
            i0 = p[j0]
            cur = cost[i0 - 1, :] - u[i0] - v[1:]
            free = ~used[1:]
            upd = free & (cur < minv[1:])
            minv[1:][upd] = cur[upd]
            way[1:][upd] = j0
            free_idx = np.nonzero(free)[0]
            j1 = free_idx[np.argmin(minv[1:][free_idx])] + 1
            delta = minv[j1]
            u[p[used]] += delta
            v[used] -= delta
            minv[1:][free] -= delta
            j0 = j1
            if p[j0] == 0:
                break
        while j0 != 0:
            j1 = way[j0]
            p[j0] = p[j1]
            j0 = j1
    col_of_row = np.zeros(n, dtype=np.int64)
    for j in range(1, n + 1):
        col_of_row[p[j] - 1] = j - 1
    return np.arange(n), col_of_row


def _solve_assignment(d):
    if _scipy_lsa is not None:
        return _scipy_lsa(d)
    return _hungarian_np(d)


def earth_movers_distance(gt_pc, gen_pc):
    """Forward pass of EarthMoversDistance.

    gt_pc, gen_pc: point clouds, e.g. (1, N, 3); squeezed then truncated to 5000.
    Returns a scalar: mean distance under the optimal (Hungarian) matching.
    """
    gt = jnp.squeeze(jnp.asarray(gt_pc))[:5000, :]
    gen = jnp.squeeze(jnp.asarray(gen_pc))[:5000, :]
    m, n = gt.shape[0], gen.shape[0]

    d_pad = pallas_cdist_padded(gt, gen)      # Pallas TPU kernel (padded output)
    jax.block_until_ready(d_pad)

    # Slice the padded rows/cols on the HOST (they hold distances to origin
    # points and must not enter the assignment); no second device HBM pass.
    d = np.asarray(d_pad)[:m, :n]

    # TODO(synk): Hungarian assignment is a sequential combinatorial solver with
    # no clean Pallas equivalent; run on host exactly as the reference does.
    row, col = _solve_assignment(d)
    return float(d[row, col].mean())


if __name__ == "__main__":
    key = jax.random.PRNGKey(0)
    k1, k2 = jax.random.split(key)

    # Small synthetic point clouds: (batch=1, points=256, dims=3)
    gt_pc = jax.random.normal(k1, (1, 256, 3), dtype=jnp.float32)
    gen_pc = jax.random.normal(k2, (1, 256, 3), dtype=jnp.float32)

    emd = earth_movers_distance(gt_pc, gen_pc)

    # Sanity check against a pure-numpy reference for the cdist + EMD path.
    gt_np = np.asarray(jnp.squeeze(gt_pc))[:5000, :]
    gen_np = np.asarray(jnp.squeeze(gen_pc))[:5000, :]
    d_ref = np.sqrt(
        np.maximum(
            (gt_np ** 2).sum(-1)[:, None]
            + (gen_np ** 2).sum(-1)[None, :]
            - 2.0 * gt_np @ gen_np.T,
            0.0,
        )
    )
    r, c = _solve_assignment(d_ref)
    emd_ref = d_ref[r, c].mean()
    assert np.allclose(emd, emd_ref, rtol=1e-4, atol=1e-4), (emd, emd_ref)

    print("KERNEL_OK")
</pallas_src>

<mosaic_0001>
module attributes {stable_mosaic.version = 11 : i64} {
  func.func @_cdist_kernel(%arg0: i32, %arg1: memref<32x8xf32, #tpu.memory_space<vmem>>, %arg2: memref<8x256xf32, #tpu.memory_space<vmem>>, %arg3: memref<32x256xf32, #tpu.memory_space<vmem>>) attributes {dimension_semantics = [#tpu.dimension_semantics<parallel>], iteration_bounds = array<i64: 8>, scalar_prefetch = 0 : i64, scratch_operands = 0 : i64, tpu.core_type = #tpu.core_type<tc>, window_params = [{transform_indices = @transform_0, window_bounds = array<i64: 32, 8>}, {pipeline_mode = #tpu.pipeline_mode<synchronous>, transform_indices = @transform_1, window_bounds = array<i64: 8, 256>}, {transform_indices = @transform_2, window_bounds = array<i64: 32, 256>}]} {
    %c0 = arith.constant 0 : index
    %c0_0 = arith.constant 0 : index
    %0 = vector.load %arg1[%c0, %c0_0] : memref<32x8xf32, #tpu.memory_space<vmem>>, vector<32x8xf32>
    %c0_1 = arith.constant 0 : index
    %c0_2 = arith.constant 0 : index
    %1 = vector.load %arg2[%c0_1, %c0_2] : memref<8x256xf32, #tpu.memory_space<vmem>>, vector<8x256xf32>
    %cst = arith.constant dense<0.000000e+00> : vector<32x256xf32>
    %2 = tpu.matmul %0, %1, %cst {dimension_numbers = #tpu.dot_dimension_numbers<[1], [0], [0], [1], [0, 0, 1, 1], [], []>} : vector<32x8xf32>, vector<8x256xf32>, vector<32x256xf32> -> vector<32x256xf32>
    %3 = arith.mulf %0, %0 : vector<32x8xf32>
    %cst_3 = arith.constant dense<0.000000e+00> : vector<32xf32>
    %4 = vector.multi_reduction <add>, %3, %cst_3 [1] : vector<32x8xf32> to vector<32xf32>
    %5 = vector.shape_cast %4 : vector<32xf32> to vector<32x1xf32>
    %6 = arith.mulf %1, %1 : vector<8x256xf32>
    %cst_4 = arith.constant dense<0.000000e+00> : vector<256xf32>
    %7 = vector.multi_reduction <add>, %6, %cst_4 [0] : vector<8x256xf32> to vector<256xf32>
    %8 = vector.shape_cast %7 : vector<256xf32> to vector<1x256xf32>
    %9 = vector.broadcast %5 : vector<32x1xf32> to vector<32x256xf32>
    %10 = vector.broadcast %8 : vector<1x256xf32> to vector<32x256xf32>
    %11 = arith.addf %9, %10 : vector<32x256xf32>
    %cst_5 = arith.constant 2.000000e+00 : f32
    %12 = vector.broadcast %cst_5 : f32 to vector<32x256xf32>
    %13 = arith.mulf %12, %2 : vector<32x256xf32>
    %14 = arith.subf %11, %13 : vector<32x256xf32>
    %cst_6 = arith.constant 0.000000e+00 : f32
    %15 = vector.broadcast %cst_6 : f32 to vector<32x256xf32>
    %16 = arith.maximumf %14, %15 : vector<32x256xf32>
    %17 = math.sqrt %16 : vector<32x256xf32>
    %c0_7 = arith.constant 0 : index
    %c0_8 = arith.constant 0 : index
    %18 = vector.load %arg3[%c0_7, %c0_8] : memref<32x256xf32, #tpu.memory_space<vmem>>, vector<32x256xf32>
    tpu.vector_store %arg3[%c0_7, %c0_8], %17 {strides = array<i32>} : memref<32x256xf32, #tpu.memory_space<vmem>>, vector<32x256xf32>,
    return
  }
  func.func @transform_0(%arg0: i32) -> (i32, i32) {
    %c0_i32 = arith.constant 0 : i32
    %c0_i32_0 = arith.constant 0 : i32
    return %arg0, %c0_i32 : i32, i32
  }
  func.func @transform_1(%arg0: i32) -> (i32, i32) {
    %c0_i32 = arith.constant 0 : i32
    %c0_i32_0 = arith.constant 0 : i32
    %c0_i32_1 = arith.constant 0 : i32
    return %c0_i32, %c0_i32_0 : i32, i32
  }
  func.func @transform_2(%arg0: i32) -> (i32, i32) {
    %c0_i32 = arith.constant 0 : i32
    %c0_i32_0 = arith.constant 0 : i32
    return %arg0, %c0_i32 : i32, i32
  }
}

</mosaic_0001>

<bundles_post_ra>
// kernel: tpu_custom_call.1
= control target key start
LH: loop header
LB: loop body
LE: loop exit
PB: predicated region body
PF: predicated region fallthrough
CT: control target
= control target key end

     0   :  { %7 = vsyncpa [#allocation3], 0  ;;  %s773_s0 = inlined_call_operand.vmem [shape: f32[256,8], index: 0, kind: input, shape index: {}]   ;;  %s774_s1 = inlined_call_operand.vmem [shape: f32[8,256], index: 1, kind: input, shape index: {}]   ;;  %s775_s2 = inlined_call_operand.hbm [shape: f32[256,256], index: 2, kind: output, shape index: {}]  }
   0x1   :  { %9 = vsyncpa [#allocation3 + $0x1], 0  ;;  %s618_s9 = smov 0   ;;  %s620_s10 = smov 0  }
   0x2   :  { %s622_s11 = smov 0   ;;  %s624_s12 = smov 0  }
   0x3 LB: > { %s639_s13 = sadd.s32 4294967295, %s597_s12   ;;  %s456_s14 = sadd.s32 4294967294, %s597_s12   ;;  %s597_s12 = sphi %s624_s12, %s781_s12   ;;  %s593_s11 = sphi %s622_s11, %s780_s11   ;;  %s589_s10 = sphi %s620_s10, %s779_s10   ;;  %s585_s9 = sphi %s618_s9, %s778_s9  }
   0x4   : > { %s643_s15 = sadd.s32 1, %s597_s12   ;;  %s69_s16 = sadd.s32 1, %s593_s11 }
   0x5   : > { %s66_s17 = ssub.s32 %s597_s12, %s643_s15  ;;  %p79_p0 = scmp.ne.s32.totalorder %s593_s11, %s589_s10 }
   0x6   : > { %p67_p1 = scmp.eq.s32.totalorder %s66_s17, 0  ;;  %p80_p2 = scmp.eq.s32.totalorder %s639_s13, 7 }
   0x7   : > { %p85_p3 = scmp.ne.s32.totalorder %s589_s10, %s585_s9  ;;  %p86_p4 = scmp.eq.s32.totalorder %s456_s14, 7 }
   0x8   : > { %s654_s18 = scalar_select %p67_p1, %s593_s11, %s69_s16  }
   0x9   : > { %p656_p5 = por %p80_p2, %p79_p0  ;;  %p660_p6 = por %p86_p4, %p85_p3 }
   0xa   : > { %p459_p7 = scmp.ge.s32.totalorder %s597_s12, 1  ;;  %p116_p8 = scmp.lt.s32.totalorder %s597_s12, 9 }
   0xc   : > { %p117_p9 = pnand %p459_p7, %p116_p8 }
   0xd   : > { %v150_v0 = vld [vmem:[%s774_s1 + $0x8] sm:$0xff] (!%p117_p9)  ;;  %v149_v1 = vld [vmem:[%s774_s1] sm:$0xff] (!%p117_p9)  ;;  %s461_s25 = sshll.u32 (!%p117_p9), %s639_s13, 2  ;;  %v599_v2 = vmov (!%p117_p9), 0.0   ;;  %vm151_vm0 = vcmask (!%p117_p9), 64512   ;;  %s135_s30 = sand.u32 (!%p117_p9), 1, %s589_s10  }
   0xe   : > { %120 = sbr.rel (%p117_p9) target bundleno = 280 (0x118), region = 28  ;;  %164 = vmatprep.subr.mxu0 (!%p117_p9), %v150_v0  ;;  %475 = vmatprep.subr.mxu1 (!%p117_p9), %v150_v0  ;;  %p139_p10 = scmp.lt.s32.totalorder (!%p117_p9), %s461_s25, 31  ;;  %v269_v15 = vmul.f32 (!%p117_p9), %v149_v1, %v149_v1  ;;  %v270_v16 = vmul.f32 (!%p117_p9), %v150_v0, %v150_v0 }
   0xf   : > { %165 = vmatpush1.msra.mxu0 (!%p117_p9), %v149_v1  ;;  %476 = vmatpush1.msra.mxu1 (!%p117_p9), %v149_v1  ;;  %s460_s3 = sshll.u32 (!%p117_p9), %s135_s30, 6  ;;  %s474_s5 = sshll.u32 (!%p117_p9), %s639_s13, 10 }
  0x10   : > { %228 = vmatprep.mubr.f32.mxu0 (!%p117_p9), %v599_v2  ;;  %240 = vmatprep.mubr.f32.mxu1 (!%p117_p9), %v599_v2  ;;  %v271_v17 = vrot.slane (!%p117_p9), %v269_v15, 4  ;;  %v277_v18 = vrot.slane (!%p117_p9), %v270_v16, 4  ;;  %s696_s4 = scalar_lea.vmem (!%p117_p9), [#allocation2], %s460_s3  ;;  %s721_s13 = scalar_lea.hbm (!%p117_p9), %s775_s2, %s474_s5 }
  0x11   : > { %s394_s6 = sshll.u32 (!%p117_p9), %s696_s4, 4  ;;  %s732_s14 = scalar_lea.sflag (!%p117_p9), [#allocation3], %s135_s30  ;;  %s723_s6 = int_to_ptr.vmem [resolvable:$true] %s394_s6 }
  0x12   : > { %v272_v19 = vadd.f32 (!%p117_p9), %v271_v17, %v269_v15  ;;  %v278_v20 = vadd.f32 (!%p117_p9), %v277_v18, %v270_v16  ;;  %s535_s16 = scalar_lea.vmem (!%p117_p9), %s723_s6, 1024  ;;  %s600_s17 = smov (!%p117_p9), [#allocation2]  }
  0x13   : > { %p536_p11 = scmp.ne.s32.totalorder (!%p117_p9), %s723_s6, %s535_s16  ;;  %s539_s21 = sshll.u32 (!%p117_p9), %s600_s17, 4  ;;  %s540_s21 = int_to_ptr.vmem [resolvable:$false] %s539_s21 }
  0x14   : > { %v273_v21 = vrot.slane (!%p117_p9), %v272_v19, 2  ;;  %v279_v22 = vrot.slane (!%p117_p9), %v278_v20, 2  ;;  %s541_s22 = scalar_lea.vmem (!%p117_p9), %s540_s21, 2048  ;;  %p542_p0 = scmp.lt.s32.totalorder (!%p117_p9), %s723_s6, %s540_s21 }
  0x15   : > { %s783_s25 = smov (!%p139_p10, %s461_s25), 31  ;;  %p537_p12 = pnand %p536_p11, %p656_p5 }
  0x16   : > { %s462_s26 = sshll.u32 %s783_s25, 3  ;;  %v274_v23 = vadd.f32 %v273_v21, %v272_v19  ;;  %v280_v24 = vadd.f32 %v279_v22, %v278_v20  ;;  %p543_p1 = scmp.lt.s32.totalorder %s541_s22, %s535_s16 }
  0x17   : > { %s142_s29 = scalar_lea.vmem %s773_s0, %s462_s26  ;;  %p538_p13 = pneg %p537_p12 }
  0x18   : > { %v145_v3 = vld [vmem:[%s142_s29] sm:$0xff]  ;;  %v147_v4 = vld [vmem:[%s142_s29 + $0x10] sm:$0xff]  ;;  %v146_v5 = vld [vmem:[%s142_s29 + $0x8] sm:$0xff]  ;;  %v275_v25 = vrot.slane %v274_v23, 1  ;;  %v281_v26 = vrot.slane %v280_v24, 1  ;;  %p544_p2 = por %p543_p1, %p542_p0 }
  0x19   : > { %463 = vmatmul.mubr.msk.f32.vlgmr.msra.gmra.mrb[0].mxu0 %vm151_vm0, %v145_v3  ;;  %465 = vmatmul.mubr.msk.f32.vlgmr.msra.gmra.mrb[0].mxu1 %vm151_vm0, %v147_v4  ;;  %v148_v6 = vld [vmem:[%s142_s29 + $0x18] sm:$0xff]  ;;  %v255_v7 = vmul.f32 %v147_v4, %v147_v4  ;;  %v253_v8 = vmul.f32 %v145_v3, %v145_v3  ;;  %v254_v9 = vmul.f32 %v146_v5, %v146_v5 }
  0x1a   : > { %234 = vmatprep.mubr.f32.mxu0 %v599_v2  ;;  %246 = vmatprep.mubr.f32.mxu1 %v599_v2  ;;  %v256_v10 = vmul.f32 %v148_v6, %v148_v6  ;;  %v276_v28 = vadd.f32 %v275_v25, %v274_v23  ;;  %v282_v29 = vadd.f32 %v281_v26, %v280_v24  ;;  %p545_p3 = pnand %p544_p2, %p538_p13 }
  0x1b   : > { %v263_v11 = vsel %vm151_vm0, %v255_v7, 0.0  ;;  %v257_v12 = vsel %vm151_vm0, %v253_v8, 0.0  ;;  %v260_v14 = vsel %vm151_vm0, %v254_v9, 0.0 }
  0x1c   : > { %264 = vadd.xlane.f32.xlu1 %v263_v11  ;;  %258 = vadd.xlane.f32.xlu0 %v257_v12  ;;  %v266_v13 = vsel %vm151_vm0, %v256_v10, 0.0 }
  0x1d   : > { %464 = vmatmul.mubr.msk.f32.gmra.mrb[2].mxu0 %vm151_vm0, %v146_v5  ;;  %466 = vmatmul.mubr.msk.f32.gmra.mrb[2].mxu1 %vm151_vm0, %v148_v6 }
  0x20   : > { %267 = vadd.xlane.f32.xlu1 %v266_v13  ;;  %261 = vadd.xlane.f32.xlu0 %v260_v14 }
  0xa9   : > { %v265_v27 = vpop.xlane.xlu1 %264  ;;  %v259_v30 = vpop.xlane.xlu0 %258 }
  0xaa   : > { %v287_v31 = vadd.f32 %v276_v28, %v265_v27  ;;  %v283_v32 = vadd.f32 %v276_v28, %v259_v30  ;;  %v288_v34 = vadd.f32 %v282_v29, %v265_v27  ;;  %v284_v36 = vadd.f32 %v282_v29, %v259_v30 }
  0xad   : > { %v268_v33 = vpop.xlane.xlu1 %267  ;;  %v262_v44 = vpop.xlane.xlu0 %261 }
  0xae   : > { %v289_v49 = vadd.f32 %v276_v28, %v268_v33  ;;  %v290_v54 = vadd.f32 %v282_v29, %v268_v33  ;;  %v285_v55 = vadd.f32 %v276_v28, %v262_v44  ;;  %v286_v61 = vadd.f32 %v282_v29, %v262_v44 }
  0xec   : > { %v242_v35 = vpop.f32.mrb[0].mxu1  ;;  %v230_v37 = vpop.f32.mrb[0].mxu0 }
  0xed   : > { %v295_v38 = vmul.f32 2.0, %v242_v35  ;;  %v291_v39 = vmul.f32 2.0, %v230_v37  ;;  %v232_v40 = vpop.f32.mrb[1].mxu0  ;;  %v244_v41 = vpop.f32.mrb[1].mxu1 }
  0xee   : > { %v292_v42 = vmul.f32 2.0, %v232_v40  ;;  %v296_v43 = vmul.f32 2.0, %v244_v41 }
  0xef   : > { %v303_v45 = vsub.f32 %v287_v31, %v295_v38  ;;  %v299_v46 = vsub.f32 %v283_v32, %v291_v39 }
  0xf0   : > { %v300_v47 = vsub.f32 %v284_v36, %v292_v42  ;;  %v304_v48 = vsub.f32 %v288_v34, %v296_v43  ;;  %v248_v50 = vpop.f32.mrb[2].mxu1  ;;  %v236_v51 = vpop.f32.mrb[2].mxu0 }
  0xf1   : > { %v311_v52 = vmax.f32 %v303_v45, 0.0  ;;  %v307_v53 = vmax.f32 %v299_v46, 0.0  ;;  %v238_v56 = vpop.f32.mrb[3].mxu0  ;;  %v250_v57 = vpop.f32.mrb[3].mxu1  ;;  %v297_v60 = vmul.f32 2.0, %v248_v50  ;;  %v293_v62 = vmul.f32 2.0, %v236_v51 }
  0xf2   : > { %v308_v58 = vmax.f32 %v300_v47, 0.0  ;;  %v312_v59 = vmax.f32 %v304_v48, 0.0  ;;  %v294_v63 = vmul.f32 2.0, %v238_v56  ;;  %v298_v0 = vmul.f32 2.0, %v250_v57 }
  0xf3   : > { %519 = vrsqrt.f32 %v311_v52  ;;  %v305_v1 = vsub.f32 %v289_v49, %v297_v60  ;;  %v301_v2 = vsub.f32 %v285_v55, %v293_v62  ;;  %vm345_vm1 = vcmp.eq.f32.partialorder %v311_v52, inf }
  0xf4   : > { %521 = vrsqrt.f32 %v307_v53  ;;  %v302_v3 = vsub.f32 %v286_v61, %v294_v63  ;;  %v306_v4 = vsub.f32 %v290_v54, %v298_v0  ;;  %vm347_vm2 = vcmp.eq.f32.partialorder %v311_v52, 0.0 }
  0xf5   : > { %523 = vrsqrt.f32 %v308_v58  ;;  %v313_v5 = vmax.f32 %v305_v1, 0.0  ;;  %v685_v6 = vmax.f32 %v301_v2, 0.0  ;;  %v348_v12 = vand.u32 2147483648, %v311_v52 }
  0xf6   : > { %525 = vrsqrt.f32 %v312_v59  ;;  %v687_v7 = vmax.f32 %v302_v3, 0.0  ;;  %v689_v8 = vmax.f32 %v306_v4, 0.0  ;;  %vm317_vm3 = vcmp.eq.f32.partialorder %v307_v53, inf }
  0xf7   : > { %527 = vrsqrt.f32 %v313_v5  ;;  %vm319_vm4 = vcmp.eq.f32.partialorder %v307_v53, 0.0  ;;  %v320_v15 = vand.u32 2147483648, %v307_v53  ;;  %vm324_vm5 = vcmp.eq.f32.partialorder %v308_v58, inf }
  0xf8   : > { %529 = vrsqrt.f32 %v685_v6  ;;  %vm326_vm6 = vcmp.eq.f32.partialorder %v308_v58, 0.0  ;;  %v327_v21 = vand.u32 2147483648, %v308_v58  ;;  %vm352_vm7 = vcmp.eq.f32.partialorder %v312_v59, inf }
  0xf9   : > { %531 = vrsqrt.f32 %v687_v7  ;;  %v355_v25 = vand.u32 2147483648, %v312_v59  ;;  %vm354_vm8 = vcmp.eq.f32.partialorder %v312_v59, 0.0  ;;  %vm359_vm9 = vcmp.eq.f32.partialorder %v313_v5, inf }
  0xfa   : > { %533 = vrsqrt.f32 %v689_v8  ;;  %vm361_vm10 = vcmp.eq.f32.partialorder %v313_v5, 0.0  ;;  %v362_v32 = vand.u32 2147483648, %v313_v5  ;;  %vm331_vm11 = vcmp.eq.f32.partialorder %v685_v6, inf }
  0xfb   : > { %vm333_vm12 = vcmp.eq.f32.partialorder %v685_v6, 0.0  ;;  %v334_v35 = vand.u32 2147483648, %v685_v6  ;;  %vm338_vm13 = vcmp.eq.f32.partialorder %v687_v7, inf  ;;  %vm340_vm14 = vcmp.eq.f32.partialorder %v687_v7, 0.0 }
  0xfc   : > { %v341_v41 = vand.u32 2147483648, %v687_v7  ;;  %vm366_vm15 = vcmp.eq.f32.partialorder %v689_v8, inf  ;;  %v369_v45 = vand.u32 2147483648, %v689_v8  ;;  %vm368_vm0 = vcmp.eq.f32.partialorder %v689_v8, 0.0 }
  0xfd   : > { %v520_v9 = vpop.eup %519 }
  0xfe   : > { %v522_v10 = vpop.eup %521  ;;  %v344_v11 = vmul.f32 %v520_v9, %v311_v52 }
  0xff   : > { %v524_v13 = vpop.eup %523  ;;  %v316_v14 = vmul.f32 %v522_v10, %v307_v53 }
 0x100   : > { %v526_v16 = vpop.eup %525  ;;  %v346_v17 = vsel %vm345_vm1, %v311_v52, %v344_v11  ;;  %v323_v18 = vmul.f32 %v524_v13, %v308_v58 }
 0x101   : > { %v349_v19 = vsel %vm347_vm2, %v348_v12, %v346_v17  ;;  %v318_v20 = vsel %vm317_vm3, %v307_v53, %v316_v14  ;;  %v351_v22 = vmul.f32 %v526_v16, %v312_v59  ;;  %v528_v29 = vpop.eup %527 }
 0x102   : > { %375 = vst [vmem:[%s696_s4 + $0x20] sm:$0xff] %v349_v19  ;;  %v321_v23 = vsel %vm319_vm4, %v320_v15, %v318_v20  ;;  %v325_v24 = vsel %vm324_vm5, %v308_v58, %v323_v18  ;;  %v530_v30 = vpop.eup %529  ;;  %v358_v31 = vmul.f32 %v528_v29, %v313_v5 }
 0x103   : > { %371 = vst [vmem:[%s696_s4] sm:$0xff] %v321_v23  ;;  %v328_v26 = vsel %vm326_vm6, %v327_v21, %v325_v24  ;;  %v353_v27 = vsel %vm352_vm7, %v312_v59, %v351_v22  ;;  %v532_v33 = vpop.eup %531  ;;  %v330_v34 = vmul.f32 %v530_v30, %v685_v6 }
 0x104   : > { %372 = vst [vmem:[%s696_s4 + $0x8] sm:$0xff] %v328_v26  ;;  %v356_v28 = vsel %vm354_vm8, %v355_v25, %v353_v27  ;;  %v534_v36 = vpop.eup %533  ;;  %v360_v37 = vsel %vm359_vm9, %v313_v5, %v358_v31  ;;  %v337_v38 = vmul.f32 %v532_v33, %v687_v7 }
 0x105   : > { %376 = vst [vmem:[%s696_s4 + $0x28] sm:$0xff] %v356_v28  ;;  %v363_v39 = vsel %vm361_vm10, %v362_v32, %v360_v37  ;;  %v332_v40 = vsel %vm331_vm11, %v685_v6, %v330_v34  ;;  %v365_v42 = vmul.f32 %v534_v36, %v689_v8 }
 0x106   : > { %377 = vst [vmem:[%s696_s4 + $0x30] sm:$0xff] %v363_v39  ;;  %v335_v43 = vsel %vm333_vm12, %v334_v35, %v332_v40  ;;  %v339_v44 = vsel %vm338_vm13, %v687_v7, %v337_v38 }
 0x107   : > { %373 = vst [vmem:[%s696_s4 + $0x10] sm:$0xff] %v335_v43  ;;  %v342_v46 = vsel %vm340_vm14, %v341_v41, %v339_v44  ;;  %v367_v47 = vsel %vm366_vm15, %v689_v8, %v365_v42 }
 0x108   : > { %374 = vst [vmem:[%s696_s4 + $0x18] sm:$0xff] %v342_v46  ;;  %v370_v48 = vsel %vm368_vm0, %v369_v45, %v367_v47 }
 0x109   : > { %378 = vst [vmem:[%s696_s4 + $0x38] sm:$0xff] %v370_v48 }
 0x10a   : > { %548 = shalt.err (!%p545_p3)
}
 0x10b   : > { %s549_s23 = scalar_lea.hbm %s721_s13, 1024  ;;  %s553_s26 = scalar_lea.hbm %s775_s2, 8192 }
 0x10c   : > { %p550_p4 = scmp.ne.s32.totalorder %s721_s13, %s549_s23  ;;  %p554_p9 = scmp.lt.u32.totalorder %s721_s13, %s775_s2 }
 0x10d   : > { %p555_p10 = scmp.lt.u32.totalorder %s553_s26, %s549_s23  ;;  %p557_p12 = scmp.lt.u32.totalorder %s549_s23, %s721_s13 }
 0x10e   : > { %p551_p7 = pnand %p550_p4, %p656_p5 }
 0x10f   : > { %p556_p11 = por %p555_p10, %p554_p9 }
 0x110   : > { %p552_p8 = pneg %p551_p7 }
 0x111   : > { %p558_p13 = por %p557_p12, %p556_p11 }
 0x113   : > { %p559_p0 = pnand %p558_p13, %p552_p8 }
 0x115   : > { %562 = shalt.err (!%p559_p0)
}
 0x116   : > { %s601_s29 = smov 256   ;;  %s602_s30 = smov 16  }
 0x117   : > { %477 = dma.vmem_to_hbm [thread:$0]  (%p656_p5), %s723_s6, 1024, %s721_s13, %s732_s14, %s601_s29, %s601_s29, %s602_s30  }
 0x118 PF: > { %p483_p1 = scmp.ge.s32.totalorder %s597_s12, 2  ;;  %s409_s3 = sand.u32 1, %s585_s9  }
 0x119   : > { %s410_s4 = scalar_lea.sflag [#allocation3], %s409_s3 }
 0x11a   : > { %p480_p2 = pnand %p483_p1, %p660_p6 }
 0x11c   : > { %580 = dma.done.wait (!%p480_p2), %s410_s4, 1024  }
 0x11d   : > { %582 = vsyncadd (!%p480_p2), %s410_s4, 4294966272  ;;  %p12_p3 = scmp.ge.s32.totalorder %s643_s15, 10   ;;  %s778_s9 = smov %s589_s10 }
 0x11e   : > { %s779_s10 = smov %s593_s11  ;;  %s780_s11 = smov %s654_s18 }
 0x11f   : > { %s781_s12 = smov %s643_s15  ;;  %14 = sbr.rel (!%p12_p3) target bundleno = 3 (0x3), region = 63 }
 0x126   :  { %415 = vsyncpa [#allocation3], 1 }
 0x127   :  { %417 = vsyncpa [#allocation3 + $0x1], 1 }

</bundles_post_ra>
